<compile_context>
chip_gen: v7x
topology: tpu7x:2x2x1
jax: 0.10.0
libtpu: 0.0.40
codegen_flags: <defaults>
</compile_context>

<pallas_src>
import jax
import jax.numpy as jnp
from jax.experimental import pallas as pl
from jax.experimental.pallas import tpu as pltpu


# ---------------------------------------------------------------------------
# Gram matrix:  gram(fm)[b] = fm[b] @ fm[b].T / (c*h*w)
# ---------------------------------------------------------------------------
def gram_pallas(feature_map):
    b, c, h, w = feature_map.shape
    hw = h * w
    fm = feature_map.reshape(b, c, hw)
    scale = 1.0 / float(c * h * w)

    def kernel(fm_ref, o_ref):
        f = fm_ref[...].astype(jnp.float32)                      # (c, hw)
        # f @ f.T on the MXU (contract the last dim of both operands).
        g = jax.lax.dot_general(
            f, f, dimension_numbers=(((1,), (1,)), ((), ())),
            preferred_element_type=jnp.float32)
        o_ref[...] = g * scale

    return pl.pallas_call(
        kernel,
        out_shape=jax.ShapeDtypeStruct((b, c, c), jnp.float32),
        grid=(b,),
        in_specs=[pl.BlockSpec((None, c, hw), lambda i: (i, 0, 0))],
        out_specs=pl.BlockSpec((None, c, c), lambda i: (i, 0, 0)),
        compiler_params=pltpu.CompilerParams(
            dimension_semantics=("parallel",)),
    )(fm)


# ---------------------------------------------------------------------------
# sum((a - b)^2)  ==  nn.MSELoss(reduction='sum')  (accumulator grid)
# ---------------------------------------------------------------------------
def sum_squared_diff(a, b):
    assert a.shape == b.shape, (a.shape, b.shape)
    if a.ndim < 3:
        a = a.reshape((1,) * (3 - a.ndim) + a.shape)
        b = b.reshape(a.shape)
    else:
        a = a.reshape((-1,) + a.shape[-2:])
        b = b.reshape(a.shape)
    n, r, cc = a.shape

    def kernel(a_ref, b_ref, o_ref, acc_ref):
        i = pl.program_id(0)

        @pl.when(i == 0)
        def _init():
            acc_ref[...] = jnp.zeros_like(acc_ref)

        d = a_ref[...].astype(jnp.float32) - b_ref[...].astype(jnp.float32)
        acc_ref[...] += jnp.reshape(jnp.sum(d * d), (1, 1))

        @pl.when(i == pl.num_programs(0) - 1)
        def _fin():
            o_ref[...] = acc_ref[...]

    out = pl.pallas_call(
        kernel,
        out_shape=jax.ShapeDtypeStruct((1, 1), jnp.float32),
        grid=(n,),
        in_specs=[pl.BlockSpec((None, r, cc), lambda i: (i, 0, 0)),
                  pl.BlockSpec((None, r, cc), lambda i: (i, 0, 0))],
        out_specs=pl.BlockSpec((1, 1), lambda i: (0, 0)),
        scratch_shapes=[pltpu.VMEM((1, 1), jnp.float32)],
        compiler_params=pltpu.CompilerParams(
            dimension_semantics=("arbitrary",)),
    )(a, b)
    return out[0, 0]


# ---------------------------------------------------------------------------
# Anisotropic TV loss with L1Loss (mean) reduction.
#   y_tv = mean(|x[:,:,1:,:] - x[:,:,:h-1,:]|)
#   x_tv = mean(|x[:,:,:,1:] - x[:,:,:,:w-1]|)
#   loss = y_tv + x_tv
# ---------------------------------------------------------------------------
def tv_loss(x):
    b, c, h, w = x.shape
    bc = b * c
    x3 = x.reshape(bc, h, w)
    num_parts = 2 if (bc % 2 == 0 and bc >= 2) else 1   # megacore / 2-TC partitions
    steps = bc // num_parts
    n_y = b * c * (h - 1) * w
    n_x = b * c * h * (w - 1)

    def kernel(x_ref, oy_ref, ox_ref, acc_y, acc_x, acc_c):
        i = pl.program_id(1)

        @pl.when(i == 0)
        def _init():
            acc_y[...] = jnp.zeros_like(acc_y)
            acc_x[...] = jnp.zeros_like(acc_x)
            acc_c[...] = jnp.zeros_like(acc_c)

        xt = x_ref[...]                                              # (h, w), native dtype

        # H direction: shifted sublane read, diffs in native dtype, accumulate f32.
        dy = jnp.abs(xt[1:, :] - xt[:-1, :]).astype(jnp.float32)     # (h-1, w)

        # W direction: lane roll on the XLU + wrapped-pair correction
        # (|x[:,0]-x[:,w-1]| is the wrapped term regardless of roll direction).
        rx = pltpu.roll(xt, shift=w - 1, axis=1)
        dx = jnp.abs(rx - xt).astype(jnp.float32)                    # (h, w)
        wrap_x = jnp.sum(jnp.abs(xt[:, w - 1:w].astype(jnp.float32)
                                 - xt[:, 0:1].astype(jnp.float32)))  # scalar

        # Lane-vector accumulators: only sublane reductions in the hot loop.
        acc_y[...] += jnp.sum(dy, axis=0, keepdims=True)             # (1, w)
        acc_x[...] += jnp.sum(dx, axis=0, keepdims=True)             # (1, w)
        acc_c[...] += jnp.reshape(wrap_x, (1, 1))

        @pl.when(i == pl.num_programs(1) - 1)
        def _fin():
            oy_ref[...] = jnp.reshape(jnp.sum(acc_y[...]), (1, 1))
            ox_ref[...] = jnp.reshape(
                jnp.sum(acc_x[...]) - jnp.sum(acc_c[...]), (1, 1))

    tile_bytes_f32 = h * w * 4
    vmem_limit = int(min(48 * 2 ** 20, max(32 * 2 ** 20, 12 * tile_bytes_f32)))
    cost = pl.CostEstimate(
        flops=8 * bc * h * w,
        transcendentals=0,
        bytes_accessed=int(x3.size * x3.dtype.itemsize) + 8 * num_parts)

    out_y, out_x = pl.pallas_call(
        kernel,
        out_shape=(jax.ShapeDtypeStruct((num_parts, 1, 1), jnp.float32),
                   jax.ShapeDtypeStruct((num_parts, 1, 1), jnp.float32)),
        grid=(num_parts, steps),
        in_specs=[pl.BlockSpec((None, h, w),
                               lambda p, i: (p * steps + i, 0, 0))],
        out_specs=(pl.BlockSpec((None, 1, 1), lambda p, i: (p, 0, 0)),
                   pl.BlockSpec((None, 1, 1), lambda p, i: (p, 0, 0))),
        scratch_shapes=[pltpu.VMEM((1, w), jnp.float32),
                        pltpu.VMEM((1, w), jnp.float32),
                        pltpu.VMEM((1, 1), jnp.float32)],
        compiler_params=pltpu.CompilerParams(
            dimension_semantics=("parallel", "arbitrary"),
            vmem_limit_bytes=vmem_limit),
        cost_estimate=cost,
    )(x3)

    y_tv = jnp.sum(out_y) / jnp.float32(n_y)
    x_tv = jnp.sum(out_x) / jnp.float32(n_x)
    return y_tv + x_tv


# ---------------------------------------------------------------------------
# PerceptualLoss forward (Style + Content + TV), mirroring the PyTorch module.
# ---------------------------------------------------------------------------
class PerceptualLossPallas:
    def __init__(self, style_activations, style_layers, content_layers,
                 style_weight, content_weight, tv_weight):
        self.style_layers = list(style_layers)
        self.content_layers = list(content_layers)
        self.style_weight = style_weight
        self.content_weight = content_weight
        self.tv_weight = tv_weight
        # StyleLoss.__init__: store the gram of the (detached) style activations.
        self.style_targets = {
            layer: gram_pallas(style_activations[layer])
            for layer in self.style_layers}

    def __call__(self, x, img, content_activations):
        style_loss = jnp.float32(0.0)
        for layer in self.style_layers:
            feat = x[layer]
            bsz = feat.shape[0]
            g = gram_pallas(feat)
            target = jnp.tile(self.style_targets[layer], (bsz, 1, 1))  # torch .repeat(b,1,1)
            style_loss = style_loss + sum_squared_diff(g, target)

        content_loss = jnp.float32(0.0)
        for layer in self.content_layers:
            feat = x[layer]
            tgt = content_activations[layer]
            _, c, h, w = feat.shape
            content_loss = content_loss + sum_squared_diff(feat, tgt) / (c * h * w)

        tv = tv_loss(img)

        style_loss = style_loss * self.style_weight
        content_loss = content_loss * self.content_weight
        tv = tv * self.tv_weight
        total = style_loss + content_loss + tv
        return {'total_loss': total, 'style_loss': style_loss,
                'content_loss': content_loss, 'tv_loss': tv}
        # TODO(synk): backward()/autograd hooks of the torch module are not kernels;
        # wrap these functions with jax.grad instead.


# ---------------------------------------------------------------------------
# Pure-JAX reference (mirrors the PyTorch forward).
# ---------------------------------------------------------------------------
def _gram_ref(fm):
    b, c, h, w = fm.shape
    f = fm.reshape(b, c, h * w).astype(jnp.float32)
    return jnp.einsum('bck,bdk->bcd', f, f) / (c * h * w)


def perceptual_loss_ref(style_activations, style_layers, content_layers,
                        style_weight, content_weight, tv_weight,
                        x, img, content_activations):
    style_targets = {l: _gram_ref(style_activations[l]) for l in style_layers}
    style_loss = jnp.float32(0.0)
    for l in style_layers:
        feat = x[l]
        bsz = feat.shape[0]
        g = _gram_ref(feat)
        t = jnp.tile(style_targets[l], (bsz, 1, 1))
        style_loss = style_loss + jnp.sum((g - t) ** 2)
    content_loss = jnp.float32(0.0)
    for l in content_layers:
        feat = x[l].astype(jnp.float32)
        tgt = content_activations[l].astype(jnp.float32)
        _, c, h, w = feat.shape
        content_loss = content_loss + jnp.sum((feat - tgt) ** 2) / (c * h * w)
    xi = img.astype(jnp.float32)
    h, w = xi.shape[2], xi.shape[3]
    y_tv = jnp.mean(jnp.abs(xi[:, :, 1:, :] - xi[:, :, :h - 1, :]))
    x_tv = jnp.mean(jnp.abs(xi[:, :, :, 1:] - xi[:, :, :, :w - 1]))
    tv = y_tv + x_tv
    style_loss = style_loss * style_weight
    content_loss = content_loss * content_weight
    tv = tv * tv_weight
    total = style_loss + content_loss + tv
    return {'total_loss': total, 'style_loss': style_loss,
            'content_loss': content_loss, 'tv_loss': tv}


if __name__ == "__main__":
    key = jax.random.PRNGKey(0)
    ks = jax.random.split(key, 6)

    style_layers = ["relu1_2", "relu2_2"]
    content_layers = ["relu2_2"]
    style_activations = {
        "relu1_2": jax.random.normal(ks[0], (1, 4, 16, 16), jnp.float32),
        "relu2_2": jax.random.normal(ks[1], (1, 8, 8, 8), jnp.float32),
    }
    x = {
        "relu1_2": jax.random.normal(ks[2], (2, 4, 16, 16), jnp.float32),
        "relu2_2": jax.random.normal(ks[3], (2, 8, 8, 8), jnp.float32),
    }
    content_activations = {
        "relu2_2": jax.random.normal(ks[4], (2, 8, 8, 8), jnp.float32),
    }
    img = jax.random.normal(ks[5], (2, 3, 16, 16), jnp.float32)

    style_weight, content_weight, tv_weight = 5.0, 1.0, 1e-2

    loss_mod = PerceptualLossPallas(style_activations, style_layers, content_layers,
                                    style_weight, content_weight, tv_weight)
    out = loss_mod(x, img, content_activations)
    out = jax.block_until_ready(out)

    ref = perceptual_loss_ref(style_activations, style_layers, content_layers,
                              style_weight, content_weight, tv_weight,
                              x, img, content_activations)
    ref = jax.block_until_ready(ref)

    # TV / content have no matmul -> tight tolerance; style/total go through the
    # MXU (default f32 matmul precision) -> slightly looser tolerance.
    checks = {
        "tv_loss": (1e-5, 1e-7),
        "content_loss": (1e-5, 1e-7),
        "style_loss": (1e-2, 1e-6),
        "total_loss": (1e-2, 1e-6),
    }
    for name, (rtol, atol) in checks.items():
        assert jnp.allclose(out[name], ref[name], rtol=rtol, atol=atol), (
            name, out[name], ref[name])

    print("KERNEL_OK")
</pallas_src>

<mosaic_0001>
module attributes {stable_mosaic.version = 11 : i64} {
  func.func @kernel(%arg0: i32, %arg1: memref<1x4x256xf32, #tpu.memory_space<vmem>>, %arg2: memref<1x4x4xf32, #tpu.memory_space<vmem>>) attributes {dimension_semantics = [#tpu.dimension_semantics<parallel>], iteration_bounds = array<i64: 1>, scalar_prefetch = 0 : i64, scratch_operands = 0 : i64, tpu.core_type = #tpu.core_type<tc>, window_params = [{transform_indices = @transform_0, window_bounds = array<i64: 1, 4, 256>}, {transform_indices = @transform_1, window_bounds = array<i64: 1, 4, 4>}]} {
    %c0 = arith.constant 0 : index
    %c0_0 = arith.constant 0 : index
    %c0_1 = arith.constant 0 : index
    %0 = vector.load %arg1[%c0, %c0_0, %c0_1] : memref<1x4x256xf32, #tpu.memory_space<vmem>>, vector<1x4x256xf32>
    %1 = vector.shape_cast %0 : vector<1x4x256xf32> to vector<4x256xf32>
    %cst = arith.constant dense<0.000000e+00> : vector<4x4xf32>
    %2 = tpu.matmul %1, %1, %cst {dimension_numbers = #tpu.dot_dimension_numbers<[1], [1], [0], [0], [0, 0, 1, 0], [], []>} : vector<4x256xf32>, vector<4x256xf32>, vector<4x4xf32> -> vector<4x4xf32>
    %cst_2 = arith.constant 9.765625E-4 : f32
    %3 = vector.broadcast %cst_2 : f32 to vector<4x4xf32>
    %4 = arith.mulf %2, %3 : vector<4x4xf32>
    %c0_3 = arith.constant 0 : index
    %c0_4 = arith.constant 0 : index
    %c0_5 = arith.constant 0 : index
    %5 = vector.load %arg2[%c0_3, %c0_4, %c0_5] : memref<1x4x4xf32, #tpu.memory_space<vmem>>, vector<1x4x4xf32>
    %6 = vector.shape_cast %5 : vector<1x4x4xf32> to vector<4x4xf32>
    %7 = vector.shape_cast %4 : vector<4x4xf32> to vector<1x4x4xf32>
    tpu.vector_store %arg2[%c0_3, %c0_4, %c0_5], %7 {strides = array<i32>} : memref<1x4x4xf32, #tpu.memory_space<vmem>>, vector<1x4x4xf32>,
    return
  }
  func.func @transform_0(%arg0: i32) -> (i32, i32, i32) {
    %c0_i32 = arith.constant 0 : i32
    %c0_i32_0 = arith.constant 0 : i32
    %c0_i32_1 = arith.constant 0 : i32
    return %arg0, %c0_i32, %c0_i32_0 : i32, i32, i32
  }
  func.func @transform_1(%arg0: i32) -> (i32, i32, i32) {
    %c0_i32 = arith.constant 0 : i32
    %c0_i32_0 = arith.constant 0 : i32
    %c0_i32_1 = arith.constant 0 : i32
    return %arg0, %c0_i32, %c0_i32_0 : i32, i32, i32
  }
}

</mosaic_0001>

<bundles_post_ra>
// kernel: tpu_custom_call.1
= control target key start
LH: loop header
LB: loop body
LE: loop exit
PB: predicated region body
PF: predicated region fallthrough
CT: control target
= control target key end

     0   :  { %6 = vsyncpa [#allocation3], 0  ;;  %s200_s0 = inlined_call_operand.hbm [shape: f32[1,4,256], index: 0, kind: input, shape index: {}]   ;;  %s201_s1 = inlined_call_operand.hbm [shape: f32[1,4,4], index: 1, kind: output, shape index: {}]  }
   0x1   :  { %7 = vsyncpa [#allocation4], 0  ;;  %s164_s6 = smov [#allocation2]   ;;  %s116_s10 = scalar_lea.hbm %s200_s0, 128 }
   0x2   :  { %s14_s7 = sshll.u32 %s164_s6, 4  ;;  %p117_p0 = scmp.ne.s32.totalorder %s200_s0, %s116_s10  ;;  %s15_s7 = int_to_ptr.vmem [resolvable:$true] %s14_s7 }
   0x3   :  { %p120_p1 = scmp.lt.u32.totalorder %s116_s10, %s200_s0 }
   0x5   :  { %p122_p2 = pnand %p120_p1, %p117_p0 }
   0x7   :  { %125 = shalt.err (!%p122_p2)
}
   0x8   :  { %s126_s15 = scalar_lea.vmem %s15_s7, 128  ;;  %p131_p4 = scmp.lt.s32.totalorder %s15_s7, %s15_s7 }
   0x9   :  { %p127_p3 = scmp.ne.s32.totalorder %s15_s7, %s126_s15  ;;  %p132_p5 = scmp.lt.s32.totalorder %s126_s15, %s126_s15 }
   0xb   :  { %p133_p6 = por %p132_p5, %p131_p4 }
   0xd   :  { %p134_p7 = pnand %p133_p6, %p127_p3 }
   0xf   :  { %137 = shalt.err (!%p134_p7)
}
  0x10   :  { %17 = dma.hbm_to_vmem [thread:$0]  %s200_s0, 128, %s15_s7, [#allocation3]  }
  0x11   :  { %160 = dma.done.wait [#allocation3], 128  }
  0x12   :  { %161 = vsyncadd [#allocation3], 4294967168  ;;  %v21_v0 = vld [vmem:[#allocation2] sm:$0xff]  ;;  %s165_s18 = smov [#allocation5]   ;;  %vm96_vm0 = vcmask 27648  }
  0x13   :  { %v23_v1 = vcombine.high %v21_v0, %v21_v0  ;;  %s104_s19 = sshll.u32 %s165_s18, 4  ;;  %s105_s19 = int_to_ptr.vmem [resolvable:$true] %s104_s19 }
  0x14   :  { %s138_s20 = scalar_lea.vmem %s105_s19, 64  ;;  %p143_p9 = scmp.lt.s32.totalorder %s105_s19, %s105_s19 }
  0x15   :  { %25 = vmatprep.subr.mxu0 %v23_v1  ;;  %89 = vmatprep.mubr.f32.mxu0 %v23_v1  ;;  %p139_p8 = scmp.ne.s32.totalorder %s105_s19, %s138_s20  ;;  %p144_p10 = scmp.lt.s32.totalorder %s138_s20, %s138_s20 }
  0x16   :  { %26 = vmatpush1.xpose.msra.mxu0 %v21_v0 }
  0x17   :  { %p145_p11 = por %p144_p10, %p143_p9 }
  0x19   :  { %90 = vmatmul.mubr.f32.vlgmr.msra.gmra.mrb[0].mxu0 %v21_v0  ;;  %p146_p12 = pnand %p145_p11, %p139_p8 }
  0xec   :  { %v91_v2 = vpop.f32.mrb[0].mxu0 }
  0xed   :  { %v95_v3 = vmul.f32 0.0009765625, %v91_v2  ;;  %v93_v4 = vpop.f32.mrb[1].mxu0 }
  0xef   :  { %97 = vst.msk [vmem:[#allocation5] sm:$0xf] %vm96_vm0, %v95_v3 }
  0xf0   :  { %149 = shalt.err (!%p146_p12)
}
  0xf1   :  { %s150_s22 = scalar_lea.hbm %s201_s1, 64 }
  0xf2   :  { %p151_p13 = scmp.ne.s32.totalorder %s201_s1, %s150_s22  ;;  %p154_p0 = scmp.lt.u32.totalorder %s150_s22, %s201_s1 }
  0xf4   :  { %p156_p1 = pnand %p154_p0, %p151_p13 }
  0xf6   :  { %159 = shalt.err (!%p156_p1)
}
  0xf7   :  { %107 = dma.vmem_to_hbm [thread:$0]  %s105_s19, 64, %s201_s1, [#allocation4]  }
  0xf8   :  { %162 = dma.done.wait [#allocation4], 64  }
  0xf9   :  { %163 = vsyncadd [#allocation4], 4294967232 }
  0xfa   :  { %111 = vsyncpa [#allocation3], 1 }
  0xfb   :  { %112 = vsyncpa [#allocation4], 1 }

</bundles_post_ra>
